<compile_context>
chip_gen: v7x
topology: tpu7x:2x2x1
jax: 0.10.0
libtpu: 0.0.40
codegen_flags: <defaults>
</compile_context>

<pallas_src>
import jax
import jax.numpy as jnp
from jax.experimental import pallas as pl
from jax.experimental.pallas import tpu as pltpu

BN_EPS = 1e-5
LANE = 128


def _round_up(n, m):
    return ((n + m - 1) // m) * m


def mlp_kernel(x_ref, w0_ref, b0_ref, g1_ref, beta1_ref, w1_ref, b1_ref,
               out_ref, acc_ref):
    k = pl.program_id(0)

    # ---- init accumulator on first contraction step ----
    @pl.when(k == 0)
    def _():
        acc_ref[...] = jnp.zeros_like(acc_ref)

    # ---- layer 0 partial matmul: (B, tk) @ (tk, H1) accumulated in f32 ----
    acc_ref[...] += jnp.dot(x_ref[...], w0_ref[...],
                            preferred_element_type=jnp.float32)

    # ---- finalize on the last contraction step ----
    @pl.when(k == pl.num_programs(0) - 1)
    def _():
        # layer 0: bias + ReLU (f32)
        h = jnp.maximum(acc_ref[...] + b0_ref[...], 0.0)          # (B, H1)

        # layer 1: BatchNorm1d with full-batch (training-mode) statistics.
        # Padded H1 columns are all-zero with gamma=beta=0, so they stay zero.
        mean = jnp.mean(h, axis=0, keepdims=True)                 # (1, H1)
        cen = h - mean
        var = jnp.mean(cen * cen, axis=0, keepdims=True)          # biased variance
        h_bn = cen * jax.lax.rsqrt(var + BN_EPS) * g1_ref[...] + beta1_ref[...]

        # layer 1: Linear + ReLU (bf16 operands, f32 accumulation), lane-dense store.
        o = jnp.dot(h_bn.astype(jnp.bfloat16), w1_ref[...],
                    preferred_element_type=jnp.float32) + b1_ref[...]
        out_ref[...] = jnp.maximum(o, 0.0)                        # (B, H2p)


def mlp_forward(x_nchw, params):
    """x_nchw: (B, C, H, W) float32.  params: dict of per-layer weights."""
    B = x_nchw.shape[0]
    x_flat = x_nchw.reshape(B, -1)                                # nn.Flatten()
    F = x_flat.shape[1]

    w0, b0 = params["w0"], params["b0"]                           # (F, H1), (1, H1)
    g1, beta1 = params["gamma1"], params["beta1"]                 # (1, H1)
    w1, b1 = params["w1"], params["b1"]                           # (H1, H2), (1, H2)
    H1, H2 = w1.shape

    # Pad every lane (feature) dim to a multiple of 128; zero padding + zero-padded
    # gamma/beta/bias keeps the math exact, results sliced back afterwards.
    Fp = _round_up(F, LANE)
    H1p = _round_up(H1, LANE)
    H2p = _round_up(H2, LANE)

    xp = jnp.pad(x_flat, ((0, 0), (0, Fp - F))).astype(jnp.bfloat16)
    w0p = jnp.pad(w0, ((0, Fp - F), (0, H1p - H1))).astype(jnp.bfloat16)
    b0p = jnp.pad(b0, ((0, 0), (0, H1p - H1))).astype(jnp.float32)
    g1p = jnp.pad(g1, ((0, 0), (0, H1p - H1))).astype(jnp.float32)
    beta1p = jnp.pad(beta1, ((0, 0), (0, H1p - H1))).astype(jnp.float32)
    w1p = jnp.pad(w1, ((0, H1p - H1), (0, H2p - H2))).astype(jnp.bfloat16)
    b1p = jnp.pad(b1, ((0, 0), (0, H2p - H2))).astype(jnp.float32)

    # Tile the F contraction.  Tiles are small enough for v7x's 64 MiB VMEM
    # (double-buffered x/w0 tiles + resident accumulator + w1 stay well under 32 MiB).
    tk = next(t for t in (512, 256, 128) if Fp % t == 0)
    grid = (Fp // tk,)

    cost = pl.CostEstimate(
        flops=2 * B * Fp * H1p + 2 * B * H1p * H2p,
        transcendentals=H1p,  # rsqrt per BN feature
        bytes_accessed=(xp.size * 2 + w0p.size * 2 + w1p.size * 2
                        + (b0p.size + g1p.size + beta1p.size + b1p.size) * 4
                        + B * H2p * 4),
    )

    out = pl.pallas_call(
        mlp_kernel,
        out_shape=jax.ShapeDtypeStruct((B, H2p), jnp.float32),
        grid_spec=pltpu.PrefetchScalarGridSpec(
            num_scalar_prefetch=0,
            grid=grid,
            in_specs=[
                pl.BlockSpec((B, tk), lambda k: (0, k)),      # x tile (pipelined)
                pl.BlockSpec((tk, H1p), lambda k: (k, 0)),    # w0 tile (pipelined)
                pl.BlockSpec((1, H1p), lambda k: (0, 0)),     # b0    (resident)
                pl.BlockSpec((1, H1p), lambda k: (0, 0)),     # gamma (resident)
                pl.BlockSpec((1, H1p), lambda k: (0, 0)),     # beta  (resident)
                pl.BlockSpec((H1p, H2p), lambda k: (0, 0)),   # w1    (resident)
                pl.BlockSpec((1, H2p), lambda k: (0, 0)),     # b1    (resident)
            ],
            out_specs=pl.BlockSpec((B, H2p), lambda k: (0, 0)),
            scratch_shapes=[pltpu.VMEM((B, H1p), jnp.float32)],
        ),
        compiler_params=pltpu.CompilerParams(
            dimension_semantics=("arbitrary",),               # reduction axis
            vmem_limit_bytes=32 * 1024 * 1024,                # safe on v5e/v6e/v7x
        ),
        cost_estimate=cost,
    )(xp, w0p, b0p, g1p, beta1p, w1p, b1p)

    return out[:, :H2]


def init_params(key, nodes):
    """Deterministic init.  nodes = [F, H1, H2]."""
    F, H1, H2 = nodes
    k0, k1, k2, k3 = jax.random.split(key, 4)
    lim0 = 1.0 / jnp.sqrt(F)
    lim1 = 1.0 / jnp.sqrt(H1)
    return {
        # Linear weights stored pre-transposed: (in, out)
        "w0": jax.random.uniform(k0, (F, H1), jnp.float32, -lim0, lim0),
        "b0": jax.random.uniform(k1, (1, H1), jnp.float32, -lim0, lim0),
        # BatchNorm1d affine params (PyTorch default init: gamma=1, beta=0)
        "gamma1": jnp.ones((1, H1), jnp.float32),
        "beta1": jnp.zeros((1, H1), jnp.float32),
        "w1": jax.random.uniform(k2, (H1, H2), jnp.float32, -lim1, lim1),
        "b1": jax.random.uniform(k3, (1, H2), jnp.float32, -lim1, lim1),
    }


if __name__ == "__main__":
    key = jax.random.PRNGKey(0)
    kx, kp = jax.random.split(key)

    # Small NCHW input; flattened feature count must equal nodes[0].
    B, C, H, W = 8, 4, 16, 16
    F = C * H * W                              # 1024
    nodes = [F, 256, 128]                      # MLP([1024, 256, 128]) — lane-aligned

    x = jax.random.normal(kx, (B, C, H, W), dtype=jnp.float32)
    params = init_params(kp, nodes)

    y = mlp_forward(x, params)
    jax.block_until_ready(y)
    assert y.shape == (B, nodes[-1])
    assert bool(jnp.all(jnp.isfinite(y)))
    print("KERNEL_OK")
</pallas_src>

<mosaic_0001>
module attributes {stable_mosaic.version = 11 : i64} {
  func.func @mlp_kernel(%arg0: i32, %arg1: memref<8x512xbf16, #tpu.memory_space<vmem>>, %arg2: memref<512x256xbf16, #tpu.memory_space<vmem>>, %arg3: memref<1x256xf32, #tpu.memory_space<vmem>>, %arg4: memref<1x256xf32, #tpu.memory_space<vmem>>, %arg5: memref<1x256xf32, #tpu.memory_space<vmem>>, %arg6: memref<256x128xbf16, #tpu.memory_space<vmem>>, %arg7: memref<1x128xf32, #tpu.memory_space<vmem>>, %arg8: memref<8x128xf32, #tpu.memory_space<vmem>>, %arg9: memref<8x256xf32, #tpu.memory_space<vmem>>) attributes {dimension_semantics = [#tpu.dimension_semantics<arbitrary>], iteration_bounds = array<i64: 2>, scalar_prefetch = 0 : i64, scratch_operands = 1 : i64, tpu.core_type = #tpu.core_type<tc>, window_params = [{transform_indices = @transform_0, window_bounds = array<i64: 8, 512>}, {transform_indices = @transform_1, window_bounds = array<i64: 512, 256>}, {pipeline_mode = #tpu.pipeline_mode<synchronous>, transform_indices = @transform_2, window_bounds = array<i64: 1, 256>}, {pipeline_mode = #tpu.pipeline_mode<synchronous>, transform_indices = @transform_3, window_bounds = array<i64: 1, 256>}, {pipeline_mode = #tpu.pipeline_mode<synchronous>, transform_indices = @transform_4, window_bounds = array<i64: 1, 256>}, {pipeline_mode = #tpu.pipeline_mode<synchronous>, transform_indices = @transform_5, window_bounds = array<i64: 256, 128>}, {pipeline_mode = #tpu.pipeline_mode<synchronous>, transform_indices = @transform_6, window_bounds = array<i64: 1, 128>}, {pipeline_mode = #tpu.pipeline_mode<synchronous>, transform_indices = @transform_7, window_bounds = array<i64: 8, 128>}]} {
    %c0_i32 = arith.constant 0 : i32
    %0 = arith.cmpi eq, %arg0, %c0_i32 : i32
    %1 = arith.extui %0 : i1 to i32
    %c0_i32_0 = arith.constant 0 : i32
    %2 = arith.cmpi ne, %1, %c0_i32_0 : i32
    scf.if %2 {
      %cst_9 = arith.constant 0.000000e+00 : f32
      %12 = vector.broadcast %cst_9 : f32 to vector<8x256xf32>
      %c0_10 = arith.constant 0 : index
      %c0_11 = arith.constant 0 : index
      %13 = vector.load %arg9[%c0_10, %c0_11] : memref<8x256xf32, #tpu.memory_space<vmem>>, vector<8x256xf32>
      tpu.vector_store %arg9[%c0_10, %c0_11], %12 {strides = array<i32>} : memref<8x256xf32, #tpu.memory_space<vmem>>, vector<8x256xf32>,
    } else {
    }
    %c0 = arith.constant 0 : index
    %c0_1 = arith.constant 0 : index
    %3 = vector.load %arg9[%c0, %c0_1] : memref<8x256xf32, #tpu.memory_space<vmem>>, vector<8x256xf32>
    %c0_2 = arith.constant 0 : index
    %c0_3 = arith.constant 0 : index
    %4 = vector.load %arg1[%c0_2, %c0_3] : memref<8x512xbf16, #tpu.memory_space<vmem>>, vector<8x512xbf16>
    %c0_4 = arith.constant 0 : index
    %c0_5 = arith.constant 0 : index
    %5 = vector.load %arg2[%c0_4, %c0_5] : memref<512x256xbf16, #tpu.memory_space<vmem>>, vector<512x256xbf16>
    %cst = arith.constant dense<0.000000e+00> : vector<8x256xf32>
    %6 = tpu.matmul %4, %5, %cst {dimension_numbers = #tpu.dot_dimension_numbers<[1], [0], [0], [1], [0, 0, 1, 1], [], []>} : vector<8x512xbf16>, vector<512x256xbf16>, vector<8x256xf32> -> vector<8x256xf32>
    %7 = arith.addf %3, %6 : vector<8x256xf32>
    %c0_6 = arith.constant 0 : index
    %c0_7 = arith.constant 0 : index
    %8 = vector.load %arg9[%c0_6, %c0_7] : memref<8x256xf32, #tpu.memory_space<vmem>>, vector<8x256xf32>
    tpu.vector_store %arg9[%c0_6, %c0_7], %7 {strides = array<i32>} : memref<8x256xf32, #tpu.memory_space<vmem>>, vector<8x256xf32>,
    %c1_i32 = arith.constant 1 : i32
    %9 = arith.cmpi eq, %arg0, %c1_i32 : i32
    %10 = arith.extui %9 : i1 to i32
    %c0_i32_8 = arith.constant 0 : i32
    %11 = arith.cmpi ne, %10, %c0_i32_8 : i32
    scf.if %11 {
      %c0_9 = arith.constant 0 : index
      %c0_10 = arith.constant 0 : index
      %12 = vector.load %arg9[%c0_9, %c0_10] : memref<8x256xf32, #tpu.memory_space<vmem>>, vector<8x256xf32>
      %c0_11 = arith.constant 0 : index
      %c0_12 = arith.constant 0 : index
      %13 = vector.load %arg3[%c0_11, %c0_12] : memref<1x256xf32, #tpu.memory_space<vmem>>, vector<1x256xf32>
      %14 = vector.broadcast %13 : vector<1x256xf32> to vector<8x256xf32>
      %15 = arith.addf %12, %14 : vector<8x256xf32>
      %cst_13 = arith.constant 0.000000e+00 : f32
      %16 = vector.broadcast %cst_13 : f32 to vector<8x256xf32>
      %17 = arith.maximumf %15, %16 : vector<8x256xf32>
      %cst_14 = arith.constant dense<0.000000e+00> : vector<256xf32>
      %18 = vector.multi_reduction <add>, %17, %cst_14 [0] : vector<8x256xf32> to vector<256xf32>
      %19 = vector.shape_cast %18 : vector<256xf32> to vector<1x256xf32>
      %cst_15 = arith.constant 8.000000e+00 : f32
      %20 = vector.broadcast %cst_15 : f32 to vector<1x256xf32>
      %21 = arith.divf %19, %20 : vector<1x256xf32>
      %22 = vector.broadcast %21 : vector<1x256xf32> to vector<8x256xf32>
      %23 = arith.subf %17, %22 : vector<8x256xf32>
      %24 = arith.mulf %23, %23 : vector<8x256xf32>
      %cst_16 = arith.constant dense<0.000000e+00> : vector<256xf32>
      %25 = vector.multi_reduction <add>, %24, %cst_16 [0] : vector<8x256xf32> to vector<256xf32>
      %26 = vector.shape_cast %25 : vector<256xf32> to vector<1x256xf32>
      %cst_17 = arith.constant 8.000000e+00 : f32
      %27 = vector.broadcast %cst_17 : f32 to vector<1x256xf32>
      %28 = arith.divf %26, %27 : vector<1x256xf32>
      %cst_18 = arith.constant 9.99999974E-6 : f32
      %29 = vector.broadcast %cst_18 : f32 to vector<1x256xf32>
      %30 = arith.addf %28, %29 : vector<1x256xf32>
      %31 = math.rsqrt %30 : vector<1x256xf32>
      %32 = vector.broadcast %31 : vector<1x256xf32> to vector<8x256xf32>
      %33 = arith.mulf %23, %32 : vector<8x256xf32>
      %c0_19 = arith.constant 0 : index
      %c0_20 = arith.constant 0 : index
      %34 = vector.load %arg4[%c0_19, %c0_20] : memref<1x256xf32, #tpu.memory_space<vmem>>, vector<1x256xf32>
      %35 = vector.broadcast %34 : vector<1x256xf32> to vector<8x256xf32>
      %36 = arith.mulf %33, %35 : vector<8x256xf32>
      %c0_21 = arith.constant 0 : index
      %c0_22 = arith.constant 0 : index
      %37 = vector.load %arg5[%c0_21, %c0_22] : memref<1x256xf32, #tpu.memory_space<vmem>>, vector<1x256xf32>
      %38 = vector.broadcast %37 : vector<1x256xf32> to vector<8x256xf32>
      %39 = arith.addf %36, %38 : vector<8x256xf32>
      %40 = arith.truncf %39 : vector<8x256xf32> to vector<8x256xbf16>
      %c0_23 = arith.constant 0 : index
      %c0_24 = arith.constant 0 : index
      %41 = vector.load %arg6[%c0_23, %c0_24] : memref<256x128xbf16, #tpu.memory_space<vmem>>, vector<256x128xbf16>
      %cst_25 = arith.constant dense<0.000000e+00> : vector<8x128xf32>
      %42 = tpu.matmul %40, %41, %cst_25 {dimension_numbers = #tpu.dot_dimension_numbers<[1], [0], [0], [1], [0, 0, 1, 1], [], []>} : vector<8x256xbf16>, vector<256x128xbf16>, vector<8x128xf32> -> vector<8x128xf32>
      %c0_26 = arith.constant 0 : index
      %c0_27 = arith.constant 0 : index
      %43 = vector.load %arg7[%c0_26, %c0_27] : memref<1x128xf32, #tpu.memory_space<vmem>>, vector<1x128xf32>
      %44 = vector.broadcast %43 : vector<1x128xf32> to vector<8x128xf32>
      %45 = arith.addf %42, %44 : vector<8x128xf32>
      %cst_28 = arith.constant 0.000000e+00 : f32
      %46 = vector.broadcast %cst_28 : f32 to vector<8x128xf32>
      %47 = arith.maximumf %45, %46 : vector<8x128xf32>
      %c0_29 = arith.constant 0 : index
      %c0_30 = arith.constant 0 : index
      %48 = vector.load %arg8[%c0_29, %c0_30] : memref<8x128xf32, #tpu.memory_space<vmem>>, vector<8x128xf32>
      tpu.vector_store %arg8[%c0_29, %c0_30], %47 {strides = array<i32>} : memref<8x128xf32, #tpu.memory_space<vmem>>, vector<8x128xf32>,
    } else {
    }
    return
  }
  func.func @transform_0(%arg0: i32) -> (i32, i32) {
    %c0_i32 = arith.constant 0 : i32
    %c0_i32_0 = arith.constant 0 : i32
    return %c0_i32, %arg0 : i32, i32
  }
  func.func @transform_1(%arg0: i32) -> (i32, i32) {
    %c0_i32 = arith.constant 0 : i32
    %c0_i32_0 = arith.constant 0 : i32
    return %arg0, %c0_i32 : i32, i32
  }
  func.func @transform_2(%arg0: i32) -> (i32, i32) {
    %c0_i32 = arith.constant 0 : i32
    %c0_i32_0 = arith.constant 0 : i32
    %c0_i32_1 = arith.constant 0 : i32
    return %c0_i32, %c0_i32_0 : i32, i32
  }
  func.func @transform_3(%arg0: i32) -> (i32, i32) {
    %c0_i32 = arith.constant 0 : i32
    %c0_i32_0 = arith.constant 0 : i32
    %c0_i32_1 = arith.constant 0 : i32
    return %c0_i32, %c0_i32_0 : i32, i32
  }
  func.func @transform_4(%arg0: i32) -> (i32, i32) {
    %c0_i32 = arith.constant 0 : i32
    %c0_i32_0 = arith.constant 0 : i32
    %c0_i32_1 = arith.constant 0 : i32
    return %c0_i32, %c0_i32_0 : i32, i32
  }
  func.func @transform_5(%arg0: i32) -> (i32, i32) {
    %c0_i32 = arith.constant 0 : i32
    %c0_i32_0 = arith.constant 0 : i32
    %c0_i32_1 = arith.constant 0 : i32
    return %c0_i32, %c0_i32_0 : i32, i32
  }
  func.func @transform_6(%arg0: i32) -> (i32, i32) {
    %c0_i32 = arith.constant 0 : i32
    %c0_i32_0 = arith.constant 0 : i32
    %c0_i32_1 = arith.constant 0 : i32
    return %c0_i32, %c0_i32_0 : i32, i32
  }
  func.func @transform_7(%arg0: i32) -> (i32, i32) {
    %c0_i32 = arith.constant 0 : i32
    %c0_i32_0 = arith.constant 0 : i32
    %c0_i32_1 = arith.constant 0 : i32
    return %c0_i32, %c0_i32_0 : i32, i32
  }
}

</mosaic_0001>

<bundles_post_ra>
// kernel: tpu_custom_call.1
= control target key start
LH: loop header
LB: loop body
LE: loop exit
PB: predicated region body
PF: predicated region fallthrough
CT: control target
= control target key end

     0   :  { %12 = vsyncpa [#allocation4], 0  ;;  %s2023_s0 = inlined_call_operand.hbm [shape: bf16[8,1024], index: 0, kind: input, shape index: {}]   ;;  %s2024_s1 = inlined_call_operand.hbm [shape: bf16[1024,256], index: 1, kind: input, shape index: {}]   ;;  %s2025_s2 = inlined_call_operand.vmem [shape: f32[1,256], index: 2, kind: input, shape index: {}]   ;;  %s2026_s3 = inlined_call_operand.vmem [shape: f32[1,256], index: 3, kind: input, shape index: {}]   ;;  %s2027_s4 = inlined_call_operand.vmem [shape: f32[1,256], index: 4, kind: input, shape index: {}]   ;;  %s2028_s5 = inlined_call_operand.hbm [shape: bf16[256,128], index: 5, kind: input, shape index: {}]   ;;  %s2029_s6 = inlined_call_operand.vmem [shape: f32[1,128], index: 6, kind: input, shape index: {}]   ;;  %s2030_s7 = inlined_call_operand.hbm [shape: f32[8,128], index: 7, kind: output, shape index: {}]  }
   0x1   :  { %14 = vsyncpa [#allocation4 + $0x1], 0 }
   0x2   :  { %15 = vsyncpa [#allocation7], 0 }
   0x3   :  { %17 = vsyncpa [#allocation7 + $0x1], 0 }
   0x4   :  { %18 = vsyncpa [#allocation5], 0  ;;  %s1721_s24 = smov 0   ;;  %s1723_s25 = smov 0  }
   0x5   :  { %s1725_s26 = smov 0   ;;  %s1727_s27 = smov 0  }
   0x6 LB: > { %s1740_s28 = sadd.s32 4294967295, %s1670_s27   ;;  %p44_p0 = scmp.ne.s32.totalorder %s1662_s25, %s1658_s24  ;;  %s1670_s27 = sphi %s1727_s27, %s2046_s27   ;;  %s1666_s26 = sphi %s1725_s26, %s2045_s26   ;;  %s1662_s25 = sphi %s1723_s25, %s2044_s25   ;;  %s1658_s24 = sphi %s1721_s24, %s2043_s24  }
   0x7   : > { %p2031_p1 = scmp.eq.s32.totalorder %s1740_s28, 0  ;;  %p1193_p2 = scmp.ge.s32.totalorder %s1670_s27, 1 }
   0x8   : > { %p207_p3 = scmp.lt.s32.totalorder %s1670_s27, 3  ;;  %s1672_s8 = smov [#allocation8]  }
   0x9   : > { %p1749_p5 = por %p2031_p1, %p44_p0  ;;  %s228_s9 = sshll.u32 %s1672_s8, 4  ;;  %s229_s9 = int_to_ptr.vmem [resolvable:$true] %s228_s9 }
   0xa   : > { %p1753_p6 = pnand %p1193_p2, %p207_p3  ;;  %s1766_s11 = sadd.s32 1, %s1670_s27  }
   0xb   : > { %s2034_s29 = scalar_select %p1749_p5, 1, 0 }
   0xc   : > { %s2035_s30 = scalar_select %p1753_p6, 1, 0 }
   0xd   : > { %p1335_p7 = pneg %p1753_p6  ;;  %s31_s12 = sadd.s32 1, %s1666_s26 }
   0xe   : > { %s28_s13 = ssub.s32 %s1670_s27, %s1766_s11  ;;  %s1510_s16 = scalar_lea.hbm %s2028_s5, 2048 }
   0xf   : > { %p1761_p8 = pnand %p1335_p7, %p2031_p1  ;;  %p1511_p9 = scmp.ne.s32.totalorder %s2028_s5, %s1510_s16 }
  0x10   : > { %p1517_p13 = scmp.lt.u32.totalorder %s1510_s16, %s2028_s5 }
  0x11   : > { %p1512_p10 = pneg %p1761_p8 }
  0x13   : > { %p1513_p11 = pnand %p1512_p10, %p1511_p9 }
  0x15   : > { %p1514_p12 = pneg %p1513_p11 }
  0x17   : > { %p1519_p0 = pnand %p1517_p13, %p1514_p12 }
  0x19   : > { %1522 = shalt.err (!%p1519_p0)
}
  0x1a   : > { %s1523_s21 = scalar_lea.vmem %s229_s9, 2048  ;;  %p1531_p4 = scmp.lt.s32.totalorder %s229_s9, %s229_s9 }
  0x1b   : > { %p1524_p2 = scmp.ne.s32.totalorder %s229_s9, %s1523_s21  ;;  %p1532_p1 = scmp.lt.s32.totalorder %s1523_s21, %s1523_s21 }
  0x1d   : > { %p1526_p3 = pnand %p1524_p2, %p1512_p10  ;;  %p1533_p5 = por %p1532_p1, %p1531_p4 }
  0x1f   : > { %p1527_p7 = pneg %p1526_p3 }
  0x21   : > { %p1534_p6 = pnand %p1533_p5, %p1527_p7 }
  0x23   : > { %1537 = shalt.err (!%p1534_p6)
}
  0x24   : > { %s1673_s22 = smov 64   ;;  %s1674_s23 = smov 4  }
  0x25   : > { %1338 = dma.hbm_to_vmem [thread:$0]  (!%p1761_p8), %s2028_s5, 2048, %s229_s9, [#allocation7], %s1673_s22, %s1673_s22, %s1674_s23  }
  0x26   : > { %p29_p9 = scmp.eq.s32.totalorder %s28_s13, 0  ;;  %p38_p1 = scmp.ne.s32.totalorder %s1666_s26, %s1662_s25 }
  0x27   : > { %p39_p4 = scmp.eq.s32.totalorder %s1670_s27, 0  ;;  %p1347_p5 = scmp.lt.s32.totalorder %s1670_s27, 2 }
  0x28   : > { %s1792_s14 = scalar_select %p29_p9, %s1666_s26, %s31_s12  }
  0x29   : > { %p40_p6 = por %p39_p4, %p38_p1  ;;  %s1795_s15 = sand.u32 1, %s1666_s26  }
  0x2a   : > { %s1196_s16 = sshll.u32 %s1795_s15, 4  ;;  %s1298_s17 = sshll.u32 %s1670_s27, 8 }
  0x2b   : > { %s1802_s19 = scalar_lea.hbm %s2023_s0, %s1298_s17  ;;  %s249_s9 = scalar_lea.vmem [#allocation3], %s1196_s16 }
  0x2c   : > { %s257_s12 = sshll.u32 %s249_s9, 4  ;;  %p1806_p8 = pnand %p1347_p5, %p40_p6  ;;  %s1804_s12 = int_to_ptr.vmem [resolvable:$true] %s257_s12 }
  0x2d   : > { %s1199_s20 = sshll.u32 %s1795_s15, 9  ;;  %s264_s21 = sand.u32 1, %s1670_s27  }
  0x2e   : > { %s246_s22 = scalar_lea.sflag [#allocation4], %s1795_s15  ;;  %s1538_s23 = scalar_lea.hbm %s1802_s19, 256 }
  0x2f   : > { %p1539_p10 = scmp.ne.s32.totalorder %s1802_s19, %s1538_s23  ;;  %p1540_p11 = pneg %p1806_p8 }
  0x30   : > { %s1543_s16 = scalar_lea.hbm %s2023_s0, 512  ;;  %p1544_p0 = scmp.lt.u32.totalorder %s1802_s19, %s2023_s0 }
  0x31   : > { %p1541_p12 = pnand %p1540_p11, %p1539_p10  ;;  %p1545_p2 = scmp.lt.u32.totalorder %s1543_s16, %s1538_s23 }
  0x32   : > { %p1547_p7 = scmp.lt.u32.totalorder %s1538_s23, %s1802_s19 }
  0x33   : > { %p1542_p13 = pneg %p1541_p12  ;;  %p1546_p3 = por %p1545_p2, %p1544_p0 }
  0x35   : > { %p1548_p9 = por %p1547_p7, %p1546_p3 }
  0x37   : > { %p1549_p1 = pnand %p1548_p9, %p1542_p13 }
  0x39   : > { %1552 = shalt.err (!%p1549_p1)
}
  0x3a   : > { %s1553_s18 = scalar_lea.vmem %s1804_s12, 256  ;;  %s1675_s9 = smov [#allocation3]  }
  0x3b   : > { %p1554_p4 = scmp.ne.s32.totalorder %s1804_s12, %s1553_s18  ;;  %s1558_s24 = sshll.u32 %s1675_s9, 4  ;;  %s1559_s24 = int_to_ptr.vmem [resolvable:$false] %s1558_s24 }
  0x3c   : > { %s1560_s8 = scalar_lea.vmem %s1559_s24, 512  ;;  %p1561_p10 = scmp.lt.s32.totalorder %s1804_s12, %s1559_s24 }
  0x3d   : > { %p1556_p5 = pnand %p1554_p4, %p1540_p11  ;;  %p1562_p12 = scmp.lt.s32.totalorder %s1560_s8, %s1553_s18 }
  0x3f   : > { %p1557_p6 = pneg %p1556_p5  ;;  %p1563_p0 = por %p1562_p12, %p1561_p10 }
  0x41   : > { %p1564_p2 = pnand %p1563_p0, %p1557_p6 }
  0x43   : > { %1567 = shalt.err (!%p1564_p2)
}
  0x44   : > { %1342 = dma.hbm_to_vmem [thread:$0]  (!%p1806_p8), %s1802_s19, 256, %s1804_s12, %s246_s22  }
  0x45   : > { %s268_s23 = scalar_lea.vmem [#allocation6], %s1199_s20  ;;  %s1300_s17 = sshll.u32 %s1670_s27, 13 }
  0x46   : > { %s276_s16 = sshll.u32 %s268_s23, 4  ;;  %s1846_s9 = scalar_lea.hbm %s2024_s1, %s1300_s17  ;;  %s1840_s16 = int_to_ptr.vmem [resolvable:$true] %s276_s16 }
  0x47   : > { %s1850_s24 = scalar_lea.sflag [#allocation7], %s264_s21  ;;  %s1568_s8 = scalar_lea.hbm %s1846_s9, 8192 }
  0x48   : > { %p1569_p13 = scmp.ne.s32.totalorder %s1846_s9, %s1568_s8  ;;  %s1573_s12 = scalar_lea.hbm %s2024_s1, 16384 }
  0x49   : > { %p1574_p9 = scmp.lt.u32.totalorder %s1846_s9, %s2024_s1  ;;  %p1575_p1 = scmp.lt.u32.totalorder %s1573_s12, %s1568_s8 }
  0x4a   : > { %p1571_p3 = pnand %p1569_p13, %p1540_p11  ;;  %p1577_p5 = scmp.lt.u32.totalorder %s1568_s8, %s1846_s9 }
  0x4b   : > { %p1576_p4 = por %p1575_p1, %p1574_p9 }
  0x4c   : > { %p1572_p7 = pneg %p1571_p3 }
  0x4d   : > { %p1578_p6 = por %p1577_p5, %p1576_p4 }
  0x4f   : > { %p1579_p10 = pnand %p1578_p6, %p1572_p7 }
  0x51   : > { %1582 = shalt.err (!%p1579_p10)
}
  0x52   : > { %s1583_s27 = scalar_lea.vmem %s1840_s16, 8192  ;;  %s1676_s21 = smov [#allocation6]  }
  0x53   : > { %p1584_p12 = scmp.ne.s32.totalorder %s1840_s16, %s1583_s27  ;;  %s1588_s23 = sshll.u32 %s1676_s21, 4  ;;  %s1589_s23 = int_to_ptr.vmem [resolvable:$false] %s1588_s23 }
  0x54   : > { %s1590_s17 = scalar_lea.vmem %s1589_s23, 16384  ;;  %p1591_p13 = scmp.lt.s32.totalorder %s1840_s16, %s1589_s23 }
  0x55   : > { %p1586_p0 = pnand %p1584_p12, %p1540_p11  ;;  %p1592_p3 = scmp.lt.s32.totalorder %s1590_s17, %s1583_s27 }
  0x57   : > { %p1587_p2 = pneg %p1586_p0  ;;  %p1593_p9 = por %p1592_p3, %p1591_p13 }
  0x59   : > { %p1594_p1 = pnand %p1593_p9, %p1587_p2 }
  0x5b   : > { %1597 = shalt.err (!%p1594_p1)
}
  0x5c   : > { %s1677_s10 = smov 128   ;;  %s1678_s18 = smov 8  }
  0x5d   : > { %1345 = dma.hbm_to_vmem [thread:$0]  (!%p1806_p8), %s1846_s9, 8192, %s1840_s16, %s1850_s24, %s1677_s10, %s1677_s10, %s1678_s18  }
  0x5e   : > { %p2038_p11 = scmp.ne.s32.totalorder %s2035_s30, 0 }
  0x5f   : > { %s290_s8 = sand.u32 (!%p2038_p11), 1, %s1662_s25   ;;  %p2039_p7 = scmp.ne.s32.totalorder (!%p2038_p11), %s2034_s29, 0 }
  0x60   : > { %288 = sbr.rel (%p2038_p11) target bundleno = 713 (0x2c9), region = 48  ;;  %s1204_s15 = sshll.u32 (!%p2038_p11), %s290_s8, 4 }
  0x61   : > { %s291_s19 = scalar_lea.sflag (!%p2038_p11), [#allocation4], %s290_s8  ;;  %s1879_s12 = scalar_lea.vmem (!%p2038_p11), [#allocation3], %s1204_s15 }
  0x67   : > { %1641 = dma.done.wait (%p2039_p7), %s291_s19, 256  }
  0x68   : > { %1643 = vsyncadd (%p2039_p7), %s291_s19, 4294967040  ;;  %s299_s20 = sand.u32 1, %s1740_s28   ;;  %s1205_s13 = sshll.u32 %s290_s8, 9 }
  0x69   : > { %s300_s16 = scalar_lea.sflag [#allocation7], %s299_s20  ;;  %s1886_s9 = scalar_lea.vmem [#allocation6], %s1205_s13 }
  0x6a   : > { %1645 = dma.done.wait (%p2039_p7), %s300_s16, 8192  }
  0x6b   : > { %1647 = vsyncadd (%p2039_p7), %s300_s16, 4294959104  ;;  %p2040_p8 = scmp.eq.s32.totalorder %s1740_s28, 0 }
  0x6d   : > { %1649 = dma.done.wait (%p2040_p8), [#allocation7], 2048   ;;  %p2041_p4 = pmov %p2040_p8 }
  0x6e   : > { %p2042_p5 = scmp.ne.s32.totalorder %s1740_s28, 0 }
  0x6f   : > { %1651 = vsyncadd (%p2041_p4), [#allocation7], 4294965248  ;;  %v1679_v0 = vmov (!%p2042_p5), 0.0  }
  0x70   : > { %344 = sbr.rel (%p2042_p5) target bundleno = 119 (0x77), region = 64  ;;  %345 = vst [vmem:[#allocation2] sm:$0xff] (!%p2042_p5), %v1679_v0  ;;  %346 = vst [vmem:[#allocation2 + $0x8] sm:$0xff] (!%p2042_p5), %v1679_v0 }
  0x77 PF: > { %v1390_v1 = vld [vmem:[%s1886_s9 + $0x4] ss:$8 sps:$4 sm:$0xff]   ;;  %v1394_v3 = vld [vmem:[%s1886_s9] ss:$8 sps:$4 sm:$0xff]   ;;  %v1396_v5 = vld [vmem:[%s1886_s9 + $0x14] ss:$8 sps:$4 sm:$0xff]  }
  0x78   : > { %v1392_v2 = vld [vmem:[%s1886_s9 + $0x104] ss:$8 sps:$4 sm:$0xff]   ;;  %749 = vmatprep.subr.bf16.mxu0 %v1390_v1  ;;  %v1395_v4 = vld [vmem:[%s1886_s9 + $0x100] ss:$8 sps:$4 sm:$0xff]   ;;  %v1398_v6 = vld [vmem:[%s1886_s9 + $0x114] ss:$8 sps:$4 sm:$0xff]  }
  0x79   : > { %790 = vmatprep.subr.bf16.mxu1 %v1392_v2  ;;  %750 = vmatpush1.bf16.msra.mxu0 %v1394_v3  ;;  %v1400_v7 = vld [vmem:[%s1886_s9 + $0x10] ss:$8 sps:$4 sm:$0xff]   ;;  %v1402_v9 = vld [vmem:[%s1886_s9 + $0x24] ss:$8 sps:$4 sm:$0xff]   ;;  %v1406_v11 = vld [vmem:[%s1886_s9 + $0x20] ss:$8 sps:$4 sm:$0xff]  }
  0x7a   : > { %791 = vmatpush1.bf16.msra.mxu1 %v1395_v4  ;;  %751 = vmatprep.subr.bf16.mxu0 %v1396_v5  ;;  %v1401_v8 = vld [vmem:[%s1886_s9 + $0x110] ss:$8 sps:$4 sm:$0xff]   ;;  %v1404_v10 = vld [vmem:[%s1886_s9 + $0x124] ss:$8 sps:$4 sm:$0xff]   ;;  %v1407_v12 = vld [vmem:[%s1886_s9 + $0x120] ss:$8 sps:$4 sm:$0xff]  }
  0x7b   : > { %792 = vmatprep.subr.bf16.mxu1 %v1398_v6  ;;  %v1408_v13 = vld [vmem:[%s1886_s9 + $0x34] ss:$8 sps:$4 sm:$0xff]   ;;  %v1412_v15 = vld [vmem:[%s1886_s9 + $0x30] ss:$8 sps:$4 sm:$0xff]   ;;  %v1414_v17 = vld [vmem:[%s1886_s9 + $0x44] ss:$8 sps:$4 sm:$0xff]  }
  0x7c   : > { %v1410_v14 = vld [vmem:[%s1886_s9 + $0x134] ss:$8 sps:$4 sm:$0xff]   ;;  %v1413_v16 = vld [vmem:[%s1886_s9 + $0x130] ss:$8 sps:$4 sm:$0xff]   ;;  %v1416_v18 = vld [vmem:[%s1886_s9 + $0x144] ss:$8 sps:$4 sm:$0xff]  }
  0x7d   : > { %752 = vmatpush1.bf16.msra.mxu0 %v1400_v7  ;;  %v1418_v19 = vld [vmem:[%s1886_s9 + $0x40] ss:$8 sps:$4 sm:$0xff]   ;;  %v1420_v21 = vld [vmem:[%s1886_s9 + $0x54] ss:$8 sps:$4 sm:$0xff]   ;;  %v1424_v23 = vld [vmem:[%s1886_s9 + $0x50] ss:$8 sps:$4 sm:$0xff]  }
  0x7e   : > { %793 = vmatpush1.bf16.msra.mxu1 %v1401_v8  ;;  %753 = vmatprep.subr.bf16.mxu0 %v1402_v9  ;;  %v1419_v20 = vld [vmem:[%s1886_s9 + $0x140] ss:$8 sps:$4 sm:$0xff]   ;;  %v1422_v22 = vld [vmem:[%s1886_s9 + $0x154] ss:$8 sps:$4 sm:$0xff]   ;;  %v1425_v24 = vld [vmem:[%s1886_s9 + $0x150] ss:$8 sps:$4 sm:$0xff]  }
  0x7f   : > { %794 = vmatprep.subr.bf16.mxu1 %v1404_v10  ;;  %v1426_v25 = vld [vmem:[%s1886_s9 + $0x64] ss:$8 sps:$4 sm:$0xff]   ;;  %v1430_v27 = vld [vmem:[%s1886_s9 + $0x60] ss:$8 sps:$4 sm:$0xff]   ;;  %v1432_v29 = vld [vmem:[%s1886_s9 + $0x74] ss:$8 sps:$4 sm:$0xff]  }
  0x80   : > { %v1428_v26 = vld [vmem:[%s1886_s9 + $0x164] ss:$8 sps:$4 sm:$0xff]   ;;  %v1431_v28 = vld [vmem:[%s1886_s9 + $0x160] ss:$8 sps:$4 sm:$0xff]   ;;  %v1434_v30 = vld [vmem:[%s1886_s9 + $0x174] ss:$8 sps:$4 sm:$0xff]  }
  0x81   : > { %754 = vmatpush1.bf16.msra.mxu0 %v1406_v11  ;;  %v1436_v31 = vld [vmem:[%s1886_s9 + $0x70] ss:$8 sps:$4 sm:$0xff]   ;;  %v1438_v33 = vld [vmem:[%s1886_s9 + $0x84] ss:$8 sps:$4 sm:$0xff]   ;;  %v1442_v35 = vld [vmem:[%s1886_s9 + $0x80] ss:$8 sps:$4 sm:$0xff]  }
  0x82   : > { %795 = vmatpush1.bf16.msra.mxu1 %v1407_v12  ;;  %755 = vmatprep.subr.bf16.mxu0 %v1408_v13  ;;  %v1437_v32 = vld [vmem:[%s1886_s9 + $0x170] ss:$8 sps:$4 sm:$0xff]   ;;  %v1440_v34 = vld [vmem:[%s1886_s9 + $0x184] ss:$8 sps:$4 sm:$0xff]   ;;  %v1443_v36 = vld [vmem:[%s1886_s9 + $0x180] ss:$8 sps:$4 sm:$0xff]  }
  0x83   : > { %796 = vmatprep.subr.bf16.mxu1 %v1410_v14  ;;  %v1444_v37 = vld [vmem:[%s1886_s9 + $0x94] ss:$8 sps:$4 sm:$0xff]   ;;  %v1448_v39 = vld [vmem:[%s1886_s9 + $0x90] ss:$8 sps:$4 sm:$0xff]   ;;  %v1450_v41 = vld [vmem:[%s1886_s9 + $0xa4] ss:$8 sps:$4 sm:$0xff]  }
  0x84   : > { %v1446_v38 = vld [vmem:[%s1886_s9 + $0x194] ss:$8 sps:$4 sm:$0xff]   ;;  %v1449_v40 = vld [vmem:[%s1886_s9 + $0x190] ss:$8 sps:$4 sm:$0xff]   ;;  %v1452_v42 = vld [vmem:[%s1886_s9 + $0x1a4] ss:$8 sps:$4 sm:$0xff]  }
  0x85   : > { %756 = vmatpush1.bf16.msra.mxu0 %v1412_v15  ;;  %v1454_v43 = vld [vmem:[%s1886_s9 + $0xa0] ss:$8 sps:$4 sm:$0xff]   ;;  %v1456_v45 = vld [vmem:[%s1886_s9 + $0xb4] ss:$8 sps:$4 sm:$0xff]   ;;  %v1460_v50 = vld [vmem:[%s1886_s9 + $0xb0] ss:$8 sps:$4 sm:$0xff]  }
  0x86   : > { %797 = vmatpush1.bf16.msra.mxu1 %v1413_v16  ;;  %757 = vmatprep.subr.bf16.mxu0 %v1414_v17  ;;  %v1455_v44 = vld [vmem:[%s1886_s9 + $0x1a0] ss:$8 sps:$4 sm:$0xff]   ;;  %v1458_v46 = vld [vmem:[%s1886_s9 + $0x1b4] ss:$8 sps:$4 sm:$0xff]   ;;  %v1461_v51 = vld [vmem:[%s1886_s9 + $0x1b0] ss:$8 sps:$4 sm:$0xff]  }
  0x87   : > { %798 = vmatprep.subr.bf16.mxu1 %v1416_v18  ;;  %v349_v47 = vld [vmem:[%s1879_s12] sm:$0xff]  ;;  %v350_v49 = vld [vmem:[%s1879_s12 + $0x8] sm:$0xff]  ;;  %p1276_p6 = scmp.ne.s32.totalorder %s1740_s28, 1 }
  0x88   : > { %v1209_v48 = vcombine.high %v349_v47, %v349_v47  ;;  %v1211_v52 = vcombine.high %v350_v49, %v350_v49  ;;  %v1462_v53 = vld [vmem:[%s1886_s9 + $0xc4] ss:$8 sps:$4 sm:$0xff]   ;;  %v1466_v55 = vld [vmem:[%s1886_s9 + $0xc0] ss:$8 sps:$4 sm:$0xff]   ;;  %v1468_v57 = vld [vmem:[%s1886_s9 + $0xd4] ss:$8 sps:$4 sm:$0xff]   ;;  %v1208_v5 = vcombine.low %v349_v47, %v349_v47  ;;  %v1210_v6 = vcombine.low %v350_v49, %v350_v49 }
  0x89   : > { %758 = vmatpush1.bf16.msra.mxu0 %v1418_v19  ;;  %v1464_v54 = vld [vmem:[%s1886_s9 + $0x1c4] ss:$8 sps:$4 sm:$0xff]   ;;  %v1467_v56 = vld [vmem:[%s1886_s9 + $0x1c0] ss:$8 sps:$4 sm:$0xff]   ;;  %v1470_v58 = vld [vmem:[%s1886_s9 + $0x1d4] ss:$8 sps:$4 sm:$0xff]  }
  0x8a   : > { %799 = vmatpush1.bf16.msra.mxu1 %v1419_v20  ;;  %759 = vmatprep.subr.bf16.mxu0 %v1420_v21  ;;  %v1472_v59 = vld [vmem:[%s1886_s9 + $0xd0] ss:$8 sps:$4 sm:$0xff]   ;;  %v1474_v61 = vld [vmem:[%s1886_s9 + $0xe4] ss:$8 sps:$4 sm:$0xff]   ;;  %v1478_v63 = vld [vmem:[%s1886_s9 + $0xe0] ss:$8 sps:$4 sm:$0xff]  }
  0x8b   : > { %800 = vmatprep.subr.bf16.mxu1 %v1422_v22  ;;  %781 = vmatprep.mubr.bf16.mxu0 %v1209_v48  ;;  %v1473_v60 = vld [vmem:[%s1886_s9 + $0x1d0] ss:$8 sps:$4 sm:$0xff]   ;;  %v1476_v62 = vld [vmem:[%s1886_s9 + $0x1e4] ss:$8 sps:$4 sm:$0xff]   ;;  %v1479_v0 = vld [vmem:[%s1886_s9 + $0x1e0] ss:$8 sps:$4 sm:$0xff]  }
  0x8c   : > { %822 = vmatprep.mubr.bf16.mxu1 %v1211_v52  ;;  %v1480_v1 = vld [vmem:[%s1886_s9 + $0xf4] ss:$8 sps:$4 sm:$0xff]   ;;  %v1484_v3 = vld [vmem:[%s1886_s9 + $0xf0] ss:$8 sps:$4 sm:$0xff]   ;;  %v1490_v21 = vld [vmem:[#allocation8 + $0x40] sm:$0xff] (!%p1276_p6)  }
  0x8d   : > { %760 = vmatpush1.bf16.msra.mxu0 %v1424_v23  ;;  %v1482_v2 = vld [vmem:[%s1886_s9 + $0x1f4] ss:$8 sps:$4 sm:$0xff]   ;;  %v1485_v4 = vld [vmem:[%s1886_s9 + $0x1f0] ss:$8 sps:$4 sm:$0xff]   ;;  %v1491_v22 = vld [vmem:[#allocation8] sm:$0xff] (!%p1276_p6)  }
  0x8e   : > { %801 = vmatpush1.bf16.msra.mxu1 %v1425_v24  ;;  %761 = vmatprep.subr.bf16.mxu0 %v1426_v25  ;;  %v347_v8 = vld [vmem:[#allocation2] sm:$0xff]  ;;  %v348_v12 = vld [vmem:[#allocation2 + $0x8] sm:$0xff]  ;;  %v1492_v23 = vld [vmem:[#allocation8 + $0x48] sm:$0xff] (!%p1276_p6)  }
  0x8f   : > { %802 = vmatprep.subr.bf16.mxu1 %v1428_v26  ;;  %v1493_v24 = vld [vmem:[#allocation8 + $0x8] sm:$0xff] (!%p1276_p6)   ;;  %v1494_v25 = vld [vmem:[#allocation8 + $0x50] sm:$0xff] (!%p1276_p6)   ;;  %v843_v26 = vlaneseq (!%p1276_p6) }
  0x90   : > { %v1503_v47 = vld [vmem:[#allocation8 + $0x30] sm:$0xff] (!%p1276_p6)  }
  0x91   : > { %762 = vmatpush1.bf16.msra.mxu0 %v1430_v27  ;;  %v1495_v27 = vld [vmem:[#allocation8 + $0x10] sm:$0xff] (!%p1276_p6)  }
  0x92   : > { %803 = vmatpush1.bf16.msra.mxu1 %v1431_v28  ;;  %763 = vmatprep.subr.bf16.mxu0 %v1432_v29  ;;  %v1496_v28 = vld [vmem:[#allocation8 + $0x58] sm:$0xff] (!%p1276_p6)   ;;  %v844_v29 = vshrl.u32 (!%p1276_p6), %v843_v26, 7 }
  0x93   : > { %804 = vmatprep.subr.bf16.mxu1 %v1434_v30  ;;  %v1497_v30 = vld [vmem:[#allocation8 + $0x18] sm:$0xff] (!%p1276_p6)  }
  0x95   : > { %764 = vmatpush1.bf16.msra.mxu0 %v1436_v31  ;;  %v1498_v31 = vld [vmem:[#allocation8 + $0x60] sm:$0xff] (!%p1276_p6)  }
  0x96   : > { %805 = vmatpush1.bf16.msra.mxu1 %v1437_v32  ;;  %765 = vmatprep.subr.bf16.mxu0 %v1438_v33  ;;  %v1965_v32 = vsub.s32 (!%p1276_p6), 0, %v844_v29  ;;  %v1967_v33 = vsub.s32 (!%p1276_p6), 1, %v844_v29 }
  0x97   : > { %806 = vmatprep.subr.bf16.mxu1 %v1440_v34  ;;  %v1499_v34 = vld [vmem:[#allocation8 + $0x20] sm:$0xff] (!%p1276_p6)  }
  0x99   : > { %766 = vmatpush1.bf16.msra.mxu0 %v1442_v35  ;;  %v1500_v35 = vld [vmem:[#allocation8 + $0x68] sm:$0xff] (!%p1276_p6)  }
  0x9a   : > { %807 = vmatpush1.bf16.msra.mxu1 %v1443_v36  ;;  %767 = vmatprep.subr.bf16.mxu0 %v1444_v37  ;;  %v841_v37 = vld [vmem:[%s2025_s2] sm:$0x3] (!%p1276_p6) }
  0x9b   : > { %808 = vmatprep.subr.bf16.mxu1 %v1446_v38  ;;  %v846_v38 = vrot.slane (!%p1276_p6), %v841_v37, %v1965_v32 }
  0x9d   : > { %768 = vmatpush1.bf16.msra.mxu0 %v1448_v39  ;;  %v850_v39 = vrot.slane (!%p1276_p6), %v841_v37, %v1967_v33 }
  0x9e   : > { %809 = vmatpush1.bf16.msra.mxu1 %v1449_v40  ;;  %769 = vmatprep.subr.bf16.mxu0 %v1450_v41  ;;  %v1501_v41 = vld [vmem:[#allocation8 + $0x28] sm:$0xff] (!%p1276_p6)  }
  0x9f   : > { %810 = vmatprep.subr.bf16.mxu1 %v1452_v42 }
  0xa1   : > { %770 = vmatpush1.bf16.msra.mxu0 %v1454_v43 }
  0xa2   : > { %811 = vmatpush1.bf16.msra.mxu1 %v1455_v44  ;;  %771 = vmatprep.subr.bf16.mxu0 %v1456_v45  ;;  %v1502_v44 = vld [vmem:[#allocation8 + $0x70] sm:$0xff] (!%p1276_p6)  }
  0xa3   : > { %812 = vmatprep.subr.bf16.mxu1 %v1458_v46 }
  0xa5   : > { %772 = vmatpush1.bf16.msra.mxu0 %v1460_v50  ;;  %v1504_v50 = vld [vmem:[#allocation8 + $0x78] sm:$0xff] (!%p1276_p6)  }
  0xa6   : > { %813 = vmatpush1.bf16.msra.mxu1 %v1461_v51  ;;  %773 = vmatprep.subr.bf16.mxu0 %v1462_v53  ;;  %v1505_v53 = vld [vmem:[#allocation8 + $0x38] sm:$0xff] (!%p1276_p6)  }
  0xa7   : > { %814 = vmatprep.subr.bf16.mxu1 %v1464_v54 }
  0xa9   : > { %774 = vmatpush1.bf16.msra.mxu0 %v1466_v55 }
  0xaa   : > { %815 = vmatpush1.bf16.msra.mxu1 %v1467_v56  ;;  %775 = vmatprep.subr.bf16.mxu0 %v1468_v57 }
  0xab   : > { %816 = vmatprep.subr.bf16.mxu1 %v1470_v58 }
  0xad   : > { %776 = vmatpush1.bf16.msra.mxu0 %v1472_v59 }
  0xae   : > { %817 = vmatpush1.bf16.msra.mxu1 %v1473_v60  ;;  %777 = vmatprep.subr.bf16.mxu0 %v1474_v61 }
  0xaf   : > { %818 = vmatprep.subr.bf16.mxu1 %v1476_v62 }
  0xb1   : > { %778 = vmatpush1.bf16.msra.mxu0 %v1478_v63 }
  0xb2   : > { %819 = vmatpush1.bf16.msra.mxu1 %v1479_v0  ;;  %779 = vmatprep.subr.bf16.mxu0 %v1480_v1 }
  0xb3   : > { %820 = vmatprep.subr.bf16.mxu1 %v1482_v2 }
  0xb5   : > { %780 = vmatpush1.bf16.msra.mxu0 %v1484_v3 }
  0xb6   : > { %821 = vmatpush1.bf16.msra.mxu1 %v1485_v4  ;;  %1301 = vmatprep.subr.bf16.mxu0 (!%p1276_p6), %v1490_v21  ;;  %v910_v21 = vld [vmem:[%s2027_s4] sm:$0x3] (!%p1276_p6) }
  0xb8   : > { %782 = vmatmul.mubr.bf16.vlgmr.msra.gmra.mrb[0].mxu0 %v1208_v5 }
  0xb9   : > { %823 = vmatmul.mubr.bf16.vlgmr.msra.gmra.mrb[0].mxu1 %v1210_v6  ;;  %1302 = vmatpush3.bf16.msra.mxu0 (!%p1276_p6), %v1491_v22 }
  0xba   : > { %1303 = vmatprep.subr.bf16.mxu0 (!%p1276_p6), %v1492_v23 }
  0xbd   : > { %1304 = vmatpush3.bf16.msra.mxu0 (!%p1276_p6), %v1493_v24 }
  0xbe   : > { %1305 = vmatprep.subr.bf16.mxu0 (!%p1276_p6), %v1494_v25 }
  0xc1   : > { %1306 = vmatpush3.bf16.msra.mxu0 (!%p1276_p6), %v1495_v27  ;;  %v919_v27 = vrot.slane (!%p1276_p6), %v910_v21, %v1967_v33 }
  0xc2   : > { %1307 = vmatprep.subr.bf16.mxu0 (!%p1276_p6), %v1496_v28  ;;  %v915_v28 = vrot.slane (!%p1276_p6), %v910_v21, %v1965_v32 }
  0xc5   : > { %1308 = vmatpush3.bf16.msra.mxu0 (!%p1276_p6), %v1497_v30 }
  0xc6   : > { %1309 = vmatprep.subr.bf16.mxu0 (!%p1276_p6), %v1498_v31 }
  0xc9   : > { %1310 = vmatpush3.bf16.msra.mxu0 (!%p1276_p6), %v1499_v34 }
  0xca   : > { %1311 = vmatprep.subr.bf16.mxu0 (!%p1276_p6), %v1500_v35 }
  0xcd   : > { %1312 = vmatpush3.bf16.msra.mxu0 (!%p1276_p6), %v1501_v41 }
  0xce   : > { %1313 = vmatprep.subr.bf16.mxu0 (!%p1276_p6), %v1502_v44 }
  0xd1   : > { %1314 = vmatpush3.bf16.msra.mxu0 (!%p1276_p6), %v1503_v47 }
  0xd2   : > { %1315 = vmatprep.subr.bf16.mxu0 (!%p1276_p6), %v1504_v50 }
  0xd5   : > { %1316 = vmatpush3.bf16.msra.mxu0 (!%p1276_p6), %v1505_v53 }
 0x18b   : > { %v783_v7 = vpop.f32.mrb[0].mxu0 }
 0x18c   : > { %v824_v9 = vpop.f32.mrb[0].mxu1  ;;  %v785_v11 = vpop.f32.mrb[1].mxu0  ;;  %838 = sbr.rel (%p1276_p6) target bundleno = 688 (0x2b0), region = 68 }
 0x18d   : > { %v825_v10 = vadd.f32 %v824_v9, %v783_v7  ;;  %v826_v13 = vpop.f32.mrb[1].mxu1  ;;  %v787_v15 = vpop.f32.mrb[2].mxu0 }
 0x18e   : > { %v827_v14 = vadd.f32 %v826_v13, %v785_v11  ;;  %v828_v16 = vpop.f32.mrb[2].mxu1  ;;  %v788_v18 = vpop.f32.mrb[3].mxu0 }
 0x18f   : > { %v831_v17 = vadd.f32 %v825_v10, %v347_v8  ;;  %v829_v19 = vpop.f32.mrb[3].mxu1 }
 0x190   : > { %v832_v20 = vadd.f32 %v827_v14, %v348_v12 }
 0x191   : > { %833 = vst [vmem:[#allocation2] sm:$0xff] %v831_v17 }
 0x192   : > { %834 = vst [vmem:[#allocation2 + $0x8] sm:$0xff] %v832_v20  ;;  %v896_v20 = vld [vmem:[%s2026_s3] sm:$0x3] (!%p1276_p6) }
 0x193   : > { %v905_v22 = vrot.slane %v896_v20, %v1967_v33  ;;  %v901_v24 = vrot.slane %v896_v20, %v1965_v32 }
 0x198   : > { %v839_v40 = vld [vmem:[#allocation2] sm:$0xff] }
 0x199   : > { %v840_v36 = vld [vmem:[#allocation2 + $0x8] sm:$0xff]  ;;  %v853_v43 = vadd.f32 %v846_v38, %v839_v40 }
 0x19a   : > { %v854_v42 = vadd.f32 %v850_v39, %v840_v36  ;;  %v1277_v39 = vld [vmem:[%s2029_s6] ss:$0 sm:$0xff] }
 0x19b   : > { %v855_v46 = vmax.f32 %v853_v43, 0.0 }
 0x19c   : > { %v856_v45 = vmax.f32 %v854_v42, 0.0 }
 0x19d   : > { %v857_v49 = vrot.slane %v855_v46, 4 }
 0x19e   : > { %v863_v48 = vrot.slane %v856_v45, 4 }
 0x19f   : > { %v858_v52 = vadd.f32 %v857_v49, %v855_v46 }
 0x1a0   : > { %v864_v51 = vadd.f32 %v863_v48, %v856_v45 }
 0x1a1   : > { %v859_v55 = vrot.slane %v858_v52, 2 }
 0x1a2   : > { %v865_v54 = vrot.slane %v864_v51, 2 }
 0x1a3   : > { %v860_v57 = vadd.f32 %v859_v55, %v858_v52 }
 0x1a4   : > { %v866_v56 = vadd.f32 %v865_v54, %v864_v51 }
 0x1a5   : > { %v861_v59 = vrot.slane %v860_v57, 1 }
 0x1a6   : > { %v867_v58 = vrot.slane %v866_v56, 1 }
 0x1a7   : > { %v862_v61 = vadd.f32 %v861_v59, %v860_v57 }
 0x1a8   : > { %v868_v60 = vadd.f32 %v867_v58, %v866_v56 }
 0x1a9   : > { %v870_v63 = vmul.f32 0.125, %v862_v61 }
 0x1aa   : > { %v871_v62 = vmul.f32 0.125, %v868_v60 }
 0x1ab   : > { %v872_v1 = vsub.f32 %v855_v46, %v870_v63 }
 0x1ac   : > { %v873_v0 = vsub.f32 %v856_v45, %v871_v62 }
 0x1ad   : > { %v874_v3 = vmul.f32 %v872_v1, %v872_v1 }
 0x1ae   : > { %v875_v2 = vmul.f32 %v873_v0, %v873_v0 }
 0x1af   : > { %v876_v5 = vrot.slane %v874_v3, 4 }
 0x1b0   : > { %v882_v4 = vrot.slane %v875_v2, 4 }
 0x1b1   : > { %v877_v7 = vadd.f32 %v876_v5, %v874_v3 }
 0x1b2   : > { %v883_v6 = vadd.f32 %v882_v4, %v875_v2 }
 0x1b3   : > { %v878_v9 = vrot.slane %v877_v7, 2 }
 0x1b4   : > { %v884_v8 = vrot.slane %v883_v6, 2 }
 0x1b5   : > { %v879_v11 = vadd.f32 %v878_v9, %v877_v7 }
 0x1b6   : > { %v885_v10 = vadd.f32 %v884_v8, %v883_v6 }
 0x1b7   : > { %v880_v13 = vrot.slane %v879_v11, 1 }
 0x1b8   : > { %v886_v12 = vrot.slane %v885_v10, 1 }
 0x1b9   : > { %v881_v15 = vadd.f32 %v880_v13, %v879_v11 }
 0x1ba   : > { %v887_v14 = vadd.f32 %v886_v12, %v885_v10 }
 0x1bb   : > { %v888_v17 = vmul.f32 0.125, %v881_v15 }
 0x1bc   : > { %v889_v16 = vmul.f32 0.125, %v887_v14 }
 0x1bd   : > { %v890_v19 = vadd.f32 1e-05, %v888_v17 }
 0x1be   : > { %v891_v18 = vadd.f32 1e-05, %v889_v16 }
 0x1c0   : > { %1506 = vrsqrt.f32 %v891_v18 }
 0x1c1   : > { %1508 = vrsqrt.f32 %v890_v19 }
 0x1ca   : > { %v1507_v23 = vpop.eup %1506 }
 0x1cb   : > { %v1509_v25 = vpop.eup %1508  ;;  %v895_v26 = vmul.f32 %v1507_v23, %v873_v0 }
 0x1cc   : > { %v894_v29 = vmul.f32 %v1509_v25, %v872_v1 }
 0x1cd   : > { %v909_v30 = vmul.f32 %v905_v22, %v895_v26 }
 0x1ce   : > { %v908_v31 = vmul.f32 %v901_v24, %v894_v29 }
 0x1cf   : > { %v923_v34 = vadd.f32 %v919_v27, %v909_v30 }
 0x1d0   : > { %v922_v35 = vadd.f32 %v915_v28, %v908_v31 }
 0x1d1   : > { %v925_v36 = vpack.c.bf16 %v923_v34, %v923_v34 }
 0x1d2   : > { %v924_v37 = vpack.c.bf16 %v922_v35, %v922_v35 }
 0x1d3   : > { %1093 = vmatprep.mubr.bf16.mxu0 %v925_v36 }
 0x1d4   : > { %1094 = vmatmul.mubr.bf16.vlgmr.msra.gmra.mrb[0].mxu0 %v924_v37 }
 0x2a7   : > { %v1317_v38 = vpop.f32.mrb[0].mxu0 }
 0x2a8   : > { %v1318_v40 = vpop.f32.mrb[1].mxu0 }
 0x2a9   : > { %v1319_v41 = vadd.f32 %v1318_v40, %v1317_v38  ;;  %v1320_v42 = vpop.f32.mrb[2].mxu0 }
 0x2aa   : > { %v1321_v33 = vpop.f32.mrb[3].mxu0 }
 0x2ab   : > { %v1096_v43 = vadd.f32 %v1319_v41, %v1277_v39 }
 0x2ad   : > { %v1101_v32 = vmax.f32 %v1096_v43, 0.0 }
 0x2af   : > { %1102 = vst [vmem:[#allocation9] sm:$0xff] %v1101_v32 }
 0x2b0 PF: > { %p1349_p10 = scmp.eq.s32.totalorder %s1740_s28, 1  ;;  %s1680_s10 = smov [#allocation9]  }
 0x2b1   : > { %s1110_s18 = sshll.u32 %s1680_s10, 4  ;;  %s1111_s18 = int_to_ptr.vmem [resolvable:$true] %s1110_s18 }
 0x2b2   : > { %s1598_s8 = scalar_lea.vmem %s1111_s18, 128  ;;  %p1605_p13 = scmp.lt.s32.totalorder %s1111_s18, %s1111_s18 }
 0x2b3   : > { %p1599_p12 = scmp.ne.s32.totalorder %s1111_s18, %s1598_s8  ;;  %p1606_p3 = scmp.lt.s32.totalorder %s1598_s8, %s1598_s8 }
 0x2b5   : > { %p1600_p0 = pnand %p1599_p12, %p1349_p10  ;;  %p1607_p9 = por %p1606_p3, %p1605_p13 }
 0x2b7   : > { %p1601_p2 = pneg %p1600_p0 }
 0x2b9   : > { %p1608_p1 = pnand %p1607_p9, %p1601_p2 }
 0x2bb   : > { %1611 = shalt.err (!%p1608_p1)
}
 0x2bc   : > { %s1612_s12 = scalar_lea.hbm %s2030_s7, 128 }
 0x2bd   : > { %p1613_p11 = scmp.ne.s32.totalorder %s2030_s7, %s1612_s12  ;;  %p1618_p4 = scmp.lt.u32.totalorder %s1612_s12, %s2030_s7 }
 0x2bf   : > { %p1614_p7 = pnand %p1613_p11, %p1349_p10 }
 0x2c1   : > { %p1615_p8 = pneg %p1614_p7 }
 0x2c3   : > { %p1620_p5 = pnand %p1618_p4, %p1615_p8 }
 0x2c5   : > { %1623 = shalt.err (!%p1620_p5)
}
 0x2c6   : > { %1332 = dma.vmem_to_hbm [thread:$0]  (%p1349_p10), %s1111_s18, 128, %s2030_s7, [#allocation5]  }
 0x2c7   : > { %1653 = dma.done.wait (%p1349_p10), [#allocation5], 128  }
 0x2c8   : > { %1655 = vsyncadd (%p1349_p10), [#allocation5], 4294967168 }
 0x2c9 PF: > { %p21_p6 = scmp.ge.s32.totalorder %s1766_s11, 4   ;;  %s2043_s24 = smov %s1662_s25 }
 0x2ca   : > { %s2044_s25 = smov %s1666_s26  ;;  %s2045_s26 = smov %s1792_s14 }
 0x2cb   : > { %s2046_s27 = smov %s1766_s11  ;;  %23 = sbr.rel (!%p21_p6) target bundleno = 6 (0x6), region = 110 }
 0x2d2   :  { %1123 = vsyncpa [#allocation4], 1 }
 0x2d3   :  { %1125 = vsyncpa [#allocation4 + $0x1], 1 }
 0x2d4   :  { %1126 = vsyncpa [#allocation7], 1 }
 0x2d5   :  { %1128 = vsyncpa [#allocation7 + $0x1], 1 }
 0x2d6   :  { %1129 = vsyncpa [#allocation5], 1 }
 0x2d7   :  { %1131 = vsyncpa [#allocation5 + $0x1], 1 }

</bundles_post_ra>
